<compile_context>
chip_gen: v5e
topology: v5e:2x2
jax: 0.10.0
libtpu: 0.0.40
codegen_flags: <defaults>
</compile_context>

<pallas_src>
import functools
import math

import jax
import jax.numpy as jnp
from jax import lax
from jax.experimental import pallas as pl
from jax.experimental.pallas import tpu as pltpu

_LN2 = float(math.log(2.0))   # BCE contribution of a zeroed (x=0, y=0) lane
_MAX_S_TILE = 64 * 1024       # lane cap (feedback: allow 32-64K lanes)


def _dc_bce_kernel(x_ref, y_ref, bce_ref, inter_ref, denom_ref,
                   acc_bce, acc_inter, acc_denom, *,
                   S, S_TILE, n_s_per, needs_col_mask, approx_sigmoid):
    g = pl.program_id(0)          # spatial group    ("parallel", v7x 2nd TC)
    j = pl.program_id(2)          # spatial chunk    (reduction, innermost)

    @pl.when(j == 0)
    def _():
        acc_bce[...] = jnp.zeros_like(acc_bce)
        acc_inter[...] = jnp.zeros_like(acc_inter)
        acc_denom[...] = jnp.zeros_like(acc_denom)

    # Stream in native dtype, upcast in-registers (no host-side upcast pass).
    x = x_ref[...].astype(jnp.float32)
    y = y_ref[...].astype(jnp.float32)

    # Ragged-lane handling: zero x/y BEFORE any transcendental so garbage /
    # duplicated (clamped) lanes can never create NaN/Inf.  Their exact
    # contribution (log(2) to BCE, 0.5 to the dice denominator) is subtracted
    # in closed form in the epilogue instead of per-element selects.
    valid = None
    if needs_col_mask:
        pos = (lax.broadcasted_iota(jnp.int32, (1, S_TILE), 1)
               + (g * n_s_per + j) * S_TILE)          # UNclamped global lane
        valid = pos < S
        x = jnp.where(valid, x, 0.0)
        y = jnp.where(valid, y, 0.0)

    # One shared exp(-|x|) feeds both the stable BCE softplus and the sigmoid.
    e = jnp.exp(-jnp.abs(x))
    softplus = jnp.log1p(e)
    bce = jnp.maximum(x, 0.0) - x * y + softplus       # BCEWithLogits, per elem
    if approx_sigmoid:
        inv = pl.reciprocal(1.0 + e, approx=True)      # EUP vrcp (v7x micro-opt)
    else:
        inv = 1.0 / (1.0 + e)                          # exact (matches torch)
    p = jnp.where(x >= 0.0, inv, e * inv)              # sigmoid(x)
    if needs_col_mask and approx_sigmoid:
        # Keep the closed-form 0.5/lane correction exact under approx divide.
        p = jnp.where(valid, p, 0.5)

    # Per-row running partials only (no full-tile accumulator).
    acc_bce[...] += jnp.sum(bce, axis=1, keepdims=True)
    acc_inter[...] += jnp.sum(p * y, axis=1, keepdims=True)
    acc_denom[...] += jnp.sum(p + y, axis=1, keepdims=True)

    @pl.when(j == pl.num_programs(2) - 1)
    def _():
        bce_rows = acc_bce[...]
        denom_rows = acc_denom[...]
        if needs_col_mask:
            span = n_s_per * S_TILE                    # lanes this group spans
            valid_lanes = jnp.clip(S - g * span, 0, span).astype(jnp.float32)
            pads = jnp.float32(span) - valid_lanes     # zeroed lanes per row
            bce_rows = bce_rows - pads * _LN2
            denom_rows = denom_rows - pads * 0.5
        bce_ref[...] = bce_rows
        inter_ref[...] = acc_inter[...]
        denom_ref[...] = denom_rows


def _vmem_budget():
    """Generation-aware (working-set budget, vmem_limit_bytes)."""
    cap = None
    try:
        get_info = getattr(pltpu, "get_tpu_info", None)
        if get_info is not None:
            cap = getattr(get_info(), "vmem_capacity_bytes", None)
    except Exception:
        cap = None
    if cap is None:
        cap = 64 * 1024 * 1024                    # conservative: v7x-class / TC
    if cap >= 100 * 1024 * 1024:                  # v5e / v6e: 128 MiB VMEM
        return 36 * 1024 * 1024, 96 * 1024 * 1024
    return 18 * 1024 * 1024, 48 * 1024 * 1024     # v7x-class: 64 MiB / TC


def _pick_tiles(R, S, itemsizes, max_s_tile=None):
    # Sub-32-bit dtypes pack along sublanes: keep TM a multiple of the packing.
    sub_align = max([8] + [32 // int(b) for b in itemsizes])
    r_al = pl.cdiv(R, sub_align) * sub_align
    TM = min(r_al, 256)
    s128 = pl.cdiv(S, 128) * 128
    budget, vmem_limit = _vmem_budget()
    # Working set: 2 inputs x 2 pipeline buffers each; row accumulators are tiny.
    per_elem = 2 * sum(int(b) for b in itemsizes)
    max_s = budget // (TM * per_elem)
    lane_cap = _MAX_S_TILE if max_s_tile is None else int(max_s_tile)
    S_TILE = max(128, min(s128, (max_s // 128) * 128, lane_cap))
    return TM, S_TILE, vmem_limit


def dc_and_bce_loss(net_output, target, *, weight_ce=1.0, weight_dice=1.0,
                    smooth=1.0, approx_sigmoid=False, _max_s_tile=None):
    """DC_and_BCE_loss.forward (use_ignore_label=False).  NCHW inputs."""
    B, C, H, W = net_output.shape
    R, S = B * C, H * W

    # Contiguous reshape only; no host-side pad, no host-side upcast.
    x = net_output.reshape(R, S)
    y = target.reshape(R, S)
    if y.dtype == jnp.bool_:
        # {0,1} targets are exact in bf16 -> halve the streamed target bytes.
        y = y.astype(jnp.bfloat16)

    TM, S_TILE, vmem_limit = _pick_tiles(
        R, S, (x.dtype.itemsize, y.dtype.itemsize), _max_s_tile)
    n_r = pl.cdiv(R, TM)
    n_s_total = pl.cdiv(S, S_TILE)

    # Give the second TensorCore (v7x) work when B*C fits one row chunk by
    # splitting the spatial tiles into two "parallel" groups.
    G = 2 if (n_r == 1 and n_s_total >= 2) else 1
    n_s_per = pl.cdiv(n_s_total, G)
    needs_col_mask = (G * n_s_per * S_TILE) != S

    if G == 1:
        in_map = lambda g, i, j: (i, j)
    else:
        # Clamp overflow tiles of the last group to the last real tile; their
        # contribution is fully masked inside the kernel.
        in_map = lambda g, i, j: (i, jnp.minimum(g * n_s_per + j, n_s_total - 1))

    kernel = functools.partial(
        _dc_bce_kernel, S=S, S_TILE=S_TILE, n_s_per=n_s_per,
        needs_col_mask=needs_col_mask, approx_sigmoid=approx_sigmoid)

    out_spec = pl.BlockSpec((None, TM, 1), lambda g, i, j: (g, i, 0))
    out_shape = jax.ShapeDtypeStruct((G, n_r * TM, 1), jnp.float32)

    bce_rows, inter_rows, denom_rows = pl.pallas_call(
        kernel,
        out_shape=(out_shape, out_shape, out_shape),
        grid_spec=pltpu.PrefetchScalarGridSpec(
            num_scalar_prefetch=0,
            grid=(G, n_r, n_s_per),
            in_specs=[pl.BlockSpec((TM, S_TILE), in_map),
                      pl.BlockSpec((TM, S_TILE), in_map)],
            out_specs=[out_spec, out_spec, out_spec],
            scratch_shapes=[pltpu.VMEM((TM, 1), jnp.float32),
                            pltpu.VMEM((TM, 1), jnp.float32),
                            pltpu.VMEM((TM, 1), jnp.float32)],
        ),
        compiler_params=pltpu.CompilerParams(
            dimension_semantics=("parallel", "parallel", "arbitrary"),
            vmem_limit_bytes=vmem_limit),
    )(x, y)

    # Tiny per-(b,c) partials -> final scalars in the wrapper.  Slicing to the
    # first R rows drops the padded rows (their garbage never contaminates
    # valid rows: all kernel reductions are strictly row-wise).
    bce_valid = bce_rows[:, :R, 0]                       # (G, R)
    intersect = jnp.sum(inter_rows[:, :R, 0], axis=0)    # (R,)
    denom = jnp.sum(denom_rows[:, :R, 0], axis=0)        # (R,)

    ce_loss = jnp.sum(bce_valid) / float(R * S)          # mean over B*C*H*W
    dc = (2.0 * intersect + jnp.float32(smooth)) / jnp.maximum(
        denom + jnp.float32(smooth), 1e-8)
    dice_mean = jnp.mean(dc)                             # mean over (b, c)
    return jnp.float32(weight_ce) * ce_loss - jnp.float32(weight_dice) * dice_mean


def _reference(net_output, target, weight_ce=1.0, weight_dice=1.0, smooth=1.0):
    x = net_output.astype(jnp.float32)
    y = target.astype(jnp.float32)
    bce = jnp.maximum(x, 0.0) - x * y + jnp.log1p(jnp.exp(-jnp.abs(x)))
    ce_loss = jnp.mean(bce)
    p = jax.nn.sigmoid(x)
    axes = (2, 3)
    intersect = jnp.sum(p * y, axis=axes)
    sum_pred = jnp.sum(p, axis=axes)
    sum_gt = jnp.sum(y, axis=axes)
    dc = (2 * intersect + smooth) / jnp.maximum(sum_gt + sum_pred + smooth, 1e-8)
    dc_loss = -jnp.mean(dc)
    return weight_ce * ce_loss + weight_dice * dc_loss


if __name__ == "__main__":
    key = jax.random.PRNGKey(0)
    keys = jax.random.split(key, 8)

    # 1) Aligned f32 case (B, C, H, W) = (2, 4, 16, 16).
    shape = (2, 4, 16, 16)
    x1 = jax.random.normal(keys[0], shape, dtype=jnp.float32)
    y1 = (jax.random.uniform(keys[1], shape) > 0.5).astype(jnp.float32)
    out1 = jax.block_until_ready(dc_and_bce_loss(x1, y1))
    ref1 = _reference(x1, y1)
    assert jnp.allclose(out1, ref1, atol=1e-5, rtol=1e-5), (out1, ref1)

    # 2) Ragged rows and lanes (R=6, S=120): exercises the closed-form pad
    #    correction and the wrapper-side padded-row slicing.
    shape2 = (2, 3, 10, 12)
    x2 = jax.random.normal(keys[2], shape2, dtype=jnp.float32)
    y2 = (jax.random.uniform(keys[3], shape2) > 0.5).astype(jnp.float32)
    out2 = jax.block_until_ready(
        dc_and_bce_loss(x2, y2, weight_ce=0.7, weight_dice=1.3))
    ref2 = _reference(x2, y2, weight_ce=0.7, weight_dice=1.3)
    assert jnp.allclose(out2, ref2, atol=1e-5, rtol=1e-5), (out2, ref2)

    # 3) bf16 inputs streamed at 2 B/elem, upcast in-registers inside the kernel.
    shape3 = (4, 4, 16, 16)
    x3 = jax.random.normal(keys[4], shape3, dtype=jnp.float32).astype(jnp.bfloat16)
    y3 = (jax.random.uniform(keys[5], shape3) > 0.5).astype(jnp.bfloat16)
    out3 = jax.block_until_ready(dc_and_bce_loss(x3, y3))
    ref3 = _reference(x3, y3)   # reference sees the same bf16-rounded values
    assert jnp.allclose(out3, ref3, atol=1e-5, rtol=1e-5), (out3, ref3)

    # 4) Multi-tile spatial axis + 2-group ("parallel") split + clamped
    #    duplicate tile + bool target streamed as bf16.  _max_s_tile keeps the
    #    test shape tiny: S=600 with 256-lane tiles -> 3 tiles, G=2.
    shape4 = (1, 2, 25, 24)
    x4 = jax.random.normal(keys[6], shape4, dtype=jnp.float32)
    y4 = jax.random.uniform(keys[7], shape4) > 0.5
    out4 = jax.block_until_ready(dc_and_bce_loss(x4, y4, _max_s_tile=256))
    ref4 = _reference(x4, y4)
    assert jnp.allclose(out4, ref4, atol=1e-5, rtol=1e-5), (out4, ref4)

    # TODO(synk): use_ignore_label=True path (masked BCE/dice with target[:, -1]
    # as ignore mask) not implemented; default path (use_ignore_label=False) only.
    print("KERNEL_OK")
</pallas_src>

<mosaic_0001>
module attributes {stable_mosaic.version = 11 : i64} {
  func.func @_dc_bce_kernel(%arg0: i32, %arg1: i32, %arg2: i32, %arg3: memref<8x256xf32, #tpu.memory_space<vmem>>, %arg4: memref<8x256xf32, #tpu.memory_space<vmem>>, %arg5: memref<1x8x1xf32, #tpu.memory_space<vmem>>, %arg6: memref<1x8x1xf32, #tpu.memory_space<vmem>>, %arg7: memref<1x8x1xf32, #tpu.memory_space<vmem>>, %arg8: memref<8x1xf32, #tpu.memory_space<vmem>>, %arg9: memref<8x1xf32, #tpu.memory_space<vmem>>, %arg10: memref<8x1xf32, #tpu.memory_space<vmem>>) attributes {dimension_semantics = [#tpu.dimension_semantics<parallel>, #tpu.dimension_semantics<parallel>, #tpu.dimension_semantics<arbitrary>], iteration_bounds = array<i64: 1, 1, 1>, scalar_prefetch = 0 : i64, scratch_operands = 3 : i64, tpu.core_type = #tpu.core_type<tc>, window_params = [{transform_indices = @transform_0, window_bounds = array<i64: 8, 256>}, {transform_indices = @transform_1, window_bounds = array<i64: 8, 256>}, {transform_indices = @transform_2, window_bounds = array<i64: 1, 8, 1>}, {transform_indices = @transform_3, window_bounds = array<i64: 1, 8, 1>}, {transform_indices = @transform_4, window_bounds = array<i64: 1, 8, 1>}]} {
    %c0_i32 = arith.constant 0 : i32
    %0 = arith.cmpi eq, %arg2, %c0_i32 : i32
    %1 = arith.extui %0 : i1 to i32
    %c0_i32_0 = arith.constant 0 : i32
    %2 = arith.cmpi ne, %1, %c0_i32_0 : i32
    scf.if %2 {
      %cst_25 = arith.constant 0.000000e+00 : f32
      %43 = vector.broadcast %cst_25 : f32 to vector<8x1xf32>
      %c0_26 = arith.constant 0 : index
      %c0_27 = arith.constant 0 : index
      %44 = vector.load %arg8[%c0_26, %c0_27] : memref<8x1xf32, #tpu.memory_space<vmem>>, vector<8x1xf32>
      tpu.vector_store %arg8[%c0_26, %c0_27], %43 {strides = array<i32>} : memref<8x1xf32, #tpu.memory_space<vmem>>, vector<8x1xf32>,
      %cst_28 = arith.constant 0.000000e+00 : f32
      %45 = vector.broadcast %cst_28 : f32 to vector<8x1xf32>
      %c0_29 = arith.constant 0 : index
      %c0_30 = arith.constant 0 : index
      %46 = vector.load %arg9[%c0_29, %c0_30] : memref<8x1xf32, #tpu.memory_space<vmem>>, vector<8x1xf32>
      tpu.vector_store %arg9[%c0_29, %c0_30], %45 {strides = array<i32>} : memref<8x1xf32, #tpu.memory_space<vmem>>, vector<8x1xf32>,
      %cst_31 = arith.constant 0.000000e+00 : f32
      %47 = vector.broadcast %cst_31 : f32 to vector<8x1xf32>
      %c0_32 = arith.constant 0 : index
      %c0_33 = arith.constant 0 : index
      %48 = vector.load %arg10[%c0_32, %c0_33] : memref<8x1xf32, #tpu.memory_space<vmem>>, vector<8x1xf32>
      tpu.vector_store %arg10[%c0_32, %c0_33], %47 {strides = array<i32>} : memref<8x1xf32, #tpu.memory_space<vmem>>, vector<8x1xf32>,
    } else {
    }
    %c0 = arith.constant 0 : index
    %c0_1 = arith.constant 0 : index
    %3 = vector.load %arg3[%c0, %c0_1] : memref<8x256xf32, #tpu.memory_space<vmem>>, vector<8x256xf32>
    %c0_2 = arith.constant 0 : index
    %c0_3 = arith.constant 0 : index
    %4 = vector.load %arg4[%c0_2, %c0_3] : memref<8x256xf32, #tpu.memory_space<vmem>>, vector<8x256xf32>
    %5 = math.absf %3 : vector<8x256xf32>
    %cst = arith.constant 0.000000e+00 : f32
    %6 = vector.broadcast %cst : f32 to vector<8x256xf32>
    %7 = arith.subf %6, %5 : vector<8x256xf32>
    %8 = math.exp %7 : vector<8x256xf32>
    %9 = math.log1p %8 : vector<8x256xf32>
    %cst_4 = arith.constant 0.000000e+00 : f32
    %10 = vector.broadcast %cst_4 : f32 to vector<8x256xf32>
    %11 = arith.maximumf %3, %10 : vector<8x256xf32>
    %12 = arith.mulf %3, %4 : vector<8x256xf32>
    %13 = arith.subf %11, %12 : vector<8x256xf32>
    %14 = arith.addf %13, %9 : vector<8x256xf32>
    %cst_5 = arith.constant 1.000000e+00 : f32
    %15 = vector.broadcast %cst_5 : f32 to vector<8x256xf32>
    %16 = arith.addf %15, %8 : vector<8x256xf32>
    %cst_6 = arith.constant 1.000000e+00 : f32
    %17 = vector.broadcast %cst_6 : f32 to vector<8x256xf32>
    %18 = arith.divf %17, %16 : vector<8x256xf32>
    %cst_7 = arith.constant 0.000000e+00 : f32
    %19 = vector.broadcast %cst_7 : f32 to vector<8x256xf32>
    %20 = arith.cmpf oge, %3, %19 : vector<8x256xf32>
    %21 = arith.mulf %8, %18 : vector<8x256xf32>
    %22 = arith.select %20, %18, %21 : vector<8x256xi1>, vector<8x256xf32>
    %c0_8 = arith.constant 0 : index
    %c0_9 = arith.constant 0 : index
    %23 = vector.load %arg8[%c0_8, %c0_9] : memref<8x1xf32, #tpu.memory_space<vmem>>, vector<8x1xf32>
    %cst_10 = arith.constant dense<0.000000e+00> : vector<8xf32>
    %24 = vector.multi_reduction <add>, %14, %cst_10 [1] : vector<8x256xf32> to vector<8xf32>
    %25 = vector.shape_cast %24 : vector<8xf32> to vector<8x1xf32>
    %26 = arith.addf %23, %25 : vector<8x1xf32>
    %c0_11 = arith.constant 0 : index
    %c0_12 = arith.constant 0 : index
    %27 = vector.load %arg8[%c0_11, %c0_12] : memref<8x1xf32, #tpu.memory_space<vmem>>, vector<8x1xf32>
    tpu.vector_store %arg8[%c0_11, %c0_12], %26 {strides = array<i32>} : memref<8x1xf32, #tpu.memory_space<vmem>>, vector<8x1xf32>,
    %c0_13 = arith.constant 0 : index
    %c0_14 = arith.constant 0 : index
    %28 = vector.load %arg9[%c0_13, %c0_14] : memref<8x1xf32, #tpu.memory_space<vmem>>, vector<8x1xf32>
    %29 = arith.mulf %22, %4 : vector<8x256xf32>
    %cst_15 = arith.constant dense<0.000000e+00> : vector<8xf32>
    %30 = vector.multi_reduction <add>, %29, %cst_15 [1] : vector<8x256xf32> to vector<8xf32>
    %31 = vector.shape_cast %30 : vector<8xf32> to vector<8x1xf32>
    %32 = arith.addf %28, %31 : vector<8x1xf32>
    %c0_16 = arith.constant 0 : index
    %c0_17 = arith.constant 0 : index
    %33 = vector.load %arg9[%c0_16, %c0_17] : memref<8x1xf32, #tpu.memory_space<vmem>>, vector<8x1xf32>
    tpu.vector_store %arg9[%c0_16, %c0_17], %32 {strides = array<i32>} : memref<8x1xf32, #tpu.memory_space<vmem>>, vector<8x1xf32>,
    %c0_18 = arith.constant 0 : index
    %c0_19 = arith.constant 0 : index
    %34 = vector.load %arg10[%c0_18, %c0_19] : memref<8x1xf32, #tpu.memory_space<vmem>>, vector<8x1xf32>
    %35 = arith.addf %22, %4 : vector<8x256xf32>
    %cst_20 = arith.constant dense<0.000000e+00> : vector<8xf32>
    %36 = vector.multi_reduction <add>, %35, %cst_20 [1] : vector<8x256xf32> to vector<8xf32>
    %37 = vector.shape_cast %36 : vector<8xf32> to vector<8x1xf32>
    %38 = arith.addf %34, %37 : vector<8x1xf32>
    %c0_21 = arith.constant 0 : index
    %c0_22 = arith.constant 0 : index
    %39 = vector.load %arg10[%c0_21, %c0_22] : memref<8x1xf32, #tpu.memory_space<vmem>>, vector<8x1xf32>
    tpu.vector_store %arg10[%c0_21, %c0_22], %38 {strides = array<i32>} : memref<8x1xf32, #tpu.memory_space<vmem>>, vector<8x1xf32>,
    %c0_i32_23 = arith.constant 0 : i32
    %40 = arith.cmpi eq, %arg2, %c0_i32_23 : i32
    %41 = arith.extui %40 : i1 to i32
    %c0_i32_24 = arith.constant 0 : i32
    %42 = arith.cmpi ne, %41, %c0_i32_24 : i32
    scf.if %42 {
      %c0_25 = arith.constant 0 : index
      %c0_26 = arith.constant 0 : index
      %43 = vector.load %arg8[%c0_25, %c0_26] : memref<8x1xf32, #tpu.memory_space<vmem>>, vector<8x1xf32>
      %c0_27 = arith.constant 0 : index
      %c0_28 = arith.constant 0 : index
      %44 = vector.load %arg10[%c0_27, %c0_28] : memref<8x1xf32, #tpu.memory_space<vmem>>, vector<8x1xf32>
      %c0_29 = arith.constant 0 : index
      %c0_30 = arith.constant 0 : index
      %c0_31 = arith.constant 0 : index
      %45 = vector.load %arg5[%c0_29, %c0_30, %c0_31] : memref<1x8x1xf32, #tpu.memory_space<vmem>>, vector<1x8x1xf32>
      %46 = vector.shape_cast %45 : vector<1x8x1xf32> to vector<8x1xf32>
      %47 = vector.shape_cast %43 : vector<8x1xf32> to vector<1x8x1xf32>
      tpu.vector_store %arg5[%c0_29, %c0_30, %c0_31], %47 {strides = array<i32>} : memref<1x8x1xf32, #tpu.memory_space<vmem>>, vector<1x8x1xf32>,
      %c0_32 = arith.constant 0 : index
      %c0_33 = arith.constant 0 : index
      %48 = vector.load %arg9[%c0_32, %c0_33] : memref<8x1xf32, #tpu.memory_space<vmem>>, vector<8x1xf32>
      %c0_34 = arith.constant 0 : index
      %c0_35 = arith.constant 0 : index
      %c0_36 = arith.constant 0 : index
      %49 = vector.load %arg6[%c0_34, %c0_35, %c0_36] : memref<1x8x1xf32, #tpu.memory_space<vmem>>, vector<1x8x1xf32>
      %50 = vector.shape_cast %49 : vector<1x8x1xf32> to vector<8x1xf32>
      %51 = vector.shape_cast %48 : vector<8x1xf32> to vector<1x8x1xf32>
      tpu.vector_store %arg6[%c0_34, %c0_35, %c0_36], %51 {strides = array<i32>} : memref<1x8x1xf32, #tpu.memory_space<vmem>>, vector<1x8x1xf32>,
      %c0_37 = arith.constant 0 : index
      %c0_38 = arith.constant 0 : index
      %c0_39 = arith.constant 0 : index
      %52 = vector.load %arg7[%c0_37, %c0_38, %c0_39] : memref<1x8x1xf32, #tpu.memory_space<vmem>>, vector<1x8x1xf32>
      %53 = vector.shape_cast %52 : vector<1x8x1xf32> to vector<8x1xf32>
      %54 = vector.shape_cast %44 : vector<8x1xf32> to vector<1x8x1xf32>
      tpu.vector_store %arg7[%c0_37, %c0_38, %c0_39], %54 {strides = array<i32>} : memref<1x8x1xf32, #tpu.memory_space<vmem>>, vector<1x8x1xf32>,
    } else {
    }
    return
  }
  func.func @transform_0(%arg0: i32, %arg1: i32, %arg2: i32) -> (i32, i32) {
    %c0_i32 = arith.constant 0 : i32
    return %arg1, %arg2 : i32, i32
  }
  func.func @transform_1(%arg0: i32, %arg1: i32, %arg2: i32) -> (i32, i32) {
    %c0_i32 = arith.constant 0 : i32
    return %arg1, %arg2 : i32, i32
  }
  func.func @transform_2(%arg0: i32, %arg1: i32, %arg2: i32) -> (i32, i32, i32) {
    %c0_i32 = arith.constant 0 : i32
    %c0_i32_0 = arith.constant 0 : i32
    return %arg0, %arg1, %c0_i32 : i32, i32, i32
  }
  func.func @transform_3(%arg0: i32, %arg1: i32, %arg2: i32) -> (i32, i32, i32) {
    %c0_i32 = arith.constant 0 : i32
    %c0_i32_0 = arith.constant 0 : i32
    return %arg0, %arg1, %c0_i32 : i32, i32, i32
  }
  func.func @transform_4(%arg0: i32, %arg1: i32, %arg2: i32) -> (i32, i32, i32) {
    %c0_i32 = arith.constant 0 : i32
    %c0_i32_0 = arith.constant 0 : i32
    return %arg0, %arg1, %c0_i32 : i32, i32, i32
  }
}

</mosaic_0001>

<bundles_post_ra>
// kernel: tpu_custom_call.1
= control target key start
LH: loop header
LB: loop body
LE: loop exit
PB: predicated region body
PF: predicated region fallthrough
CT: control target
= control target key end

     0   :  { %10 = vsyncpa [#allocation6], 0  ;;  %s328_s0 = inlined_call_operand.hbm [shape: f32[8,256], index: 0, kind: input, shape index: {}]   ;;  %s329_s1 = inlined_call_operand.hbm [shape: f32[8,256], index: 1, kind: input, shape index: {}]   ;;  %s330_s2 = inlined_call_operand.vmem [shape: f32[1,8,1], index: 2, kind: output, shape index: {0}]   ;;  %s331_s3 = inlined_call_operand.vmem [shape: f32[1,8,1], index: 3, kind: output, shape index: {1}]   ;;  %s332_s4 = inlined_call_operand.vmem [shape: f32[1,8,1], index: 4, kind: output, shape index: {2}]  }
   0x1   :  { %s17_s17 = sshll.u32 %s328_s0, 4  ;;  %s18_s17 = int_to_ptr.hbm [resolvable:$true] %s17_s17 }
   0x2   :  { %11 = vsyncpa [#allocation8], 0  ;;  %s239_s18 = smov [#allocation5]   ;;  %s28_s22 = sshll.u32 %s329_s1, 4  ;;  %s29_s22 = int_to_ptr.hbm [resolvable:$true] %s28_s22 }
   0x3   :  { %s19_s19 = sshll.u32 %s239_s18, 4  ;;  %s240_s23 = smov [#allocation7]   ;;  %s20_s19 = int_to_ptr.vmem [resolvable:$true] %s19_s19 }
   0x4   :  { %22 = dma.hbm_to_vmem [thread:$0]  %s18_s17, 256, %s20_s19, [#allocation6]  }
   0x5   :  { %s30_s24 = sshll.u32 %s240_s23, 4  ;;  %s31_s24 = int_to_ptr.vmem [resolvable:$true] %s30_s24 }
   0x6   :  { %33 = dma.hbm_to_vmem [thread:$0]  %s29_s22, 256, %s31_s24, [#allocation8]  }
   0x7   :  { %235 = dma.done.wait [#allocation6], 256  }
   0x8   :  { %236 = vsyncadd [#allocation6], 4294967040 }
   0x9   :  { %237 = dma.done.wait [#allocation8], 256  }
   0xa   :  { %238 = vsyncadd [#allocation8], 4294967040  ;;  %v273_v0 = vld [vmem:[#allocation5] sm:$0xff]  ;;  %v275_v1 = vld [vmem:[#allocation5 + $0x8] sm:$0xff]  ;;  %vm46_vm0 = vcmask 7168   ;;  %v241_v8 = vmov 0.0  }
   0xb   :  { %v54_v2 = vand.u32 2147483647, %v273_v0  ;;  %v55_v3 = vand.u32 2147483647, %v275_v1  ;;  %47 = vst.msk [vmem:[#allocation2] sm:$0xff] %vm46_vm0, %v241_v8  ;;  %v288_v13 = vld [vmem:[#allocation7] sm:$0xff] }
   0xc   :  { %48 = vst.msk [vmem:[#allocation3] sm:$0xff] %vm46_vm0, %v241_v8  ;;  %v292_v16 = vld [vmem:[#allocation7 + $0x8] sm:$0xff]  ;;  %v80_v18 = vmax.f32 %v273_v0, 0.0  ;;  %v82_v21 = vmul.f32 %v288_v13, %v273_v0  ;;  %v81_v23 = vmax.f32 %v275_v1, 0.0  ;;  %vm120_vm11 = vcmp.ge.f32.partialorder %v273_v0, 0.0 }
   0xd   :  { %v56_v4 = vsub.f32 0.0, %v54_v2  ;;  %v57_v5 = vsub.f32 0.0, %v55_v3  ;;  %49 = vst.msk [vmem:[#allocation4] sm:$0xff] %vm46_vm0, %v241_v8  ;;  %v83_v24 = vmul.f32 %v292_v16, %v275_v1  ;;  %vm121_vm12 = vcmp.ge.f32.partialorder %v275_v1, 0.0 }
   0xe   :  { %v84_v28 = vsub.f32 %v80_v18, %v82_v21 }
   0xf   :  { %v58_v6 = vmul.f32 1.442695, %v56_v4  ;;  %v60_v7 = vmul.f32 1.442695, %v57_v5  ;;  %v85_v31 = vsub.f32 %v81_v23, %v83_v24 }
  0x11   :  { %175 = vpow2.f32 %v58_v6 }
  0x12   :  { %177 = vpow2.f32 %v60_v7  ;;  %v126_v0 = vld [vmem:[#allocation2] sm:$0xff] }
  0x14   :  { %v141_v8 = vld [vmem:[#allocation4] sm:$0xff] }
  0x17   :  { %v280_v9 = vpop.eup %175 }
  0x18   :  { %v283_v10 = vpop.eup %177  ;;  %v62_v11 = vadd.f32 1.0, %v280_v9  ;;  %v65_v12 = vmul.f32 -0.5, %v280_v9  ;;  %v68_v19 = vand.u32 2147483647, %v280_v9 }
  0x19   :  { %v71_v14 = vadd.f32 1.0, %v283_v10  ;;  %v74_v15 = vmul.f32 -0.5, %v283_v10  ;;  %v77_v22 = vand.u32 2147483647, %v283_v10 }
  0x1a   :  { %179 = vlog2.f32 %v62_v11  ;;  %v66_v17 = vadd.f32 1.0, %v65_v12  ;;  %vm69_vm1 = vcmp.lt.f32.partialorder %v68_v19, 0.0004427343  ;;  %vm95_vm3 = vweird.f32 %v62_v11 }
  0x1b   :  { %181 = vlog2.f32 %v71_v14  ;;  %v75_v20 = vadd.f32 1.0, %v74_v15  ;;  %vm78_vm2 = vcmp.lt.f32.partialorder %v77_v22, 0.0004427343  ;;  %v99_v37 = vand.u32 2147483647, %v62_v11 }
  0x1c   :  { %183 = vrcp.f32 %v62_v11  ;;  %v67_v25 = vmul.f32 %v280_v9, %v66_v17  ;;  %v101_v40 = vand.u32 2147483648, %v62_v11  ;;  %v116_v44 = vand.u32 2147483648, %v71_v14 }
  0x1d   :  { %185 = vrcp.f32 %v71_v14  ;;  %v76_v27 = vmul.f32 %v283_v10, %v75_v20  ;;  %vm110_vm5 = vweird.f32 %v71_v14  ;;  %v114_v46 = vand.u32 2147483647, %v71_v14 }
  0x1e   :  { %v102_v49 = vor.u32 1.1754944e-38, %v101_v40  ;;  %vm100_vm8 = vcmp.eq.f32.partialorder %v99_v37, 8.507059e+37  ;;  %v117_v52 = vor.u32 1.1754944e-38, %v116_v44 }
  0x1f   :  { %vm115_vm10 = vcmp.eq.f32.partialorder %v114_v46, 8.507059e+37 }
  0x20   :  { %v180_v26 = vpop.eup %179 }
  0x21   :  { %v182_v29 = vpop.eup %181  ;;  %v64_v30 = vmul.f32 0.6931472, %v180_v26 }
  0x22   :  { %v184_v32 = vpop.eup %183  ;;  %v73_v33 = vmul.f32 0.6931472, %v182_v29 }
  0x23   :  { %v186_v34 = vpop.eup %185  ;;  %v70_v35 = vsel %vm69_vm1, %v67_v25, %v64_v30  ;;  %v91_v36 = vmul.f32 %v184_v32, %v62_v11  ;;  %vm96_vm4 = vweird.f32 %v184_v32 }
  0x24   :  { %v79_v38 = vsel %vm78_vm2, %v76_v27, %v73_v33  ;;  %v86_v39 = vadd.f32 %v84_v28, %v70_v35  ;;  %v106_v41 = vmul.f32 %v186_v34, %v71_v14  ;;  %vm111_vm6 = vweird.f32 %v186_v34  ;;  %vm97_vm7 = vmor %vm95_vm3, %vm96_vm4 }
  0x25   :  { %v87_v42 = vadd.f32 %v85_v31, %v79_v38  ;;  %v92_v43 = vsub.f32 1.0, %v91_v36  ;;  %vm112_vm9 = vmor %vm110_vm5, %vm111_vm6 }
  0x26   :  { %v107_v45 = vsub.f32 1.0, %v106_v41 }
  0x27   :  { %v127_v47 = vadd.f32 %v87_v42, %v86_v39  ;;  %v93_v48 = vmul.f32 %v184_v32, %v92_v43 }
  0x28   :  { %v108_v50 = vmul.f32 %v186_v34, %v107_v45 }
  0x29   :  { %128 = vadd.xlane.f32.xlu0 %v127_v47  ;;  %v94_v51 = vadd.f32 %v184_v32, %v93_v48 }
  0x2a   :  { %v109_v53 = vadd.f32 %v186_v34, %v108_v50 }
  0x2b   :  { %v98_v54 = vsel %vm97_vm7, %v184_v32, %v94_v51 }
  0x2c   :  { %v103_v55 = vsel %vm100_vm8, %v102_v49, %v98_v54  ;;  %v113_v56 = vsel %vm112_vm9, %v186_v34, %v109_v53 }
  0x2d   :  { %v118_v57 = vsel %vm115_vm10, %v117_v52, %v113_v56  ;;  %v122_v58 = vmul.f32 %v280_v9, %v103_v55  ;;  %v133_v9 = vld [vmem:[#allocation3] sm:$0xff] }
  0x2e   :  { %v123_v59 = vmul.f32 %v283_v10, %v118_v57 }
  0x2f   :  { %v124_v60 = vsel %vm120_vm11, %v103_v55, %v122_v58 }
  0x30   :  { %v125_v61 = vsel %vm121_vm12, %v118_v57, %v123_v59  ;;  %v142_v62 = vadd.f32 %v124_v60, %v288_v13  ;;  %v134_v63 = vmul.f32 %v124_v60, %v288_v13 }
  0x31   :  { %v143_v2 = vadd.f32 %v125_v61, %v292_v16  ;;  %v135_v3 = vmul.f32 %v125_v61, %v292_v16 }
  0x33   :  { %v144_v4 = vadd.f32 %v143_v2, %v142_v62  ;;  %v136_v5 = vadd.f32 %v135_v3, %v134_v63 }
  0x35   :  { %145 = vadd.xlane.f32.xlu1 %v144_v4  ;;  %137 = vadd.xlane.f32.xlu0 %v136_v5 }
  0x9c   :  { %v129_v1 = vpop.xlane.xlu0 %128 }
  0x9d   :  { %v130_v6 = vadd.f32 %v129_v1, %v126_v0 }
  0x9f   :  { %132 = vst.msk [vmem:[#allocation2] sm:$0xff] %vm46_vm0, %v130_v6 }
  0xa6   :  { %v152_v7 = vld [vmem:[#allocation2] sm:$0xff] }
  0xa7   :  { %154 = vst.msk [vmem:[%s330_s2] sm:$0xff] %vm46_vm0, %v152_v7 }
  0xa8   :  { %v146_v10 = vpop.xlane.xlu1 %145  ;;  %v138_v11 = vpop.xlane.xlu0 %137 }
  0xa9   :  { %v147_v12 = vadd.f32 %v146_v10, %v141_v8  ;;  %v139_v13 = vadd.f32 %v138_v11, %v133_v9 }
  0xab   :  { %148 = vst.msk [vmem:[#allocation4] sm:$0xff] %vm46_vm0, %v147_v12 }
  0xac   :  { %140 = vst.msk [vmem:[#allocation3] sm:$0xff] %vm46_vm0, %v139_v13 }
  0xb2   :  { %v153_v14 = vld [vmem:[#allocation4] sm:$0xff] }
  0xb3   :  { %157 = vst.msk [vmem:[%s332_s4] sm:$0xff] %vm46_vm0, %v153_v14  ;;  %v155_v15 = vld [vmem:[#allocation3] sm:$0xff] }
  0xb4   :  { %156 = vst.msk [vmem:[%s331_s3] sm:$0xff] %vm46_vm0, %v155_v15 }
  0xb5   :  { %170 = vsyncpa [#allocation6], 1 }
  0xb6   :  { %171 = vsyncpa [#allocation8], 1 }

</bundles_post_ra>
